<compile_context>
chip_gen: v6e
topology: v6e:2x2x1
jax: 0.10.0
libtpu: 0.0.40
codegen_flags: <defaults>
</compile_context>

<pallas_src>
import math
import functools

import jax
import jax.numpy as jnp
from jax.experimental import pallas as pl
from jax.experimental.pallas import tpu as pltpu


def _round_up(x: int, m: int) -> int:
    return ((x + m - 1) // m) * m


def _cdiv(a: int, b: int) -> int:
    return -(-a // b)


def _pos_enc_kernel(exp_ref, t_ref, out_ref):
    """exp_ref: (1, half) f32, t_ref: (TB, 1) f32, out_ref: (TB, dim) f32."""
    arg = t_ref[...] * exp_ref[...]                       # (TB, half), bcast both axes
    # One lane-dense full-width store (concat is a cheap XLU lane shuffle);
    # avoids two masked partial stores when half is not a multiple of 128.
    out_ref[...] = jnp.concatenate([jnp.sin(arg), jnp.cos(arg)], axis=-1)


def _choose_tile(b: int, dim: int, block_b: int) -> tuple[int, int]:
    """Pick (batch tile, padded batch). Tile is always a multiple of 8."""
    block_b = max(8, _round_up(block_b, 8))

    # VMEM cap (conservative, v5e-safe): 2 buffers * (TB*dim*4 for the output
    # tile + TB*128*4 for the lane-padded (TB,1) t tile) <= ~12 MiB.
    vmem_budget = 12 * 1024 * 1024
    tb_cap = max(8, (vmem_budget // (8 * (dim + 128))) // 8 * 8)
    block_b = min(block_b, tb_cap)

    b_min = _round_up(b, 8)
    if b_min <= block_b:
        if b_min >= 16 and b_min % 16 == 0:
            # Two equal tiles -> both v7x TensorCores run; no extra padding.
            tb = b_min // 2
        else:
            # Minimal padding; single grid step.
            tb = b_min
    else:
        # Balanced tiles: avoids near-2x padding when b is just above block_b.
        n_tiles = _cdiv(b, block_b)
        tb = _round_up(_cdiv(b, n_tiles), 8)      # <= block_b by construction
    b_pad = _round_up(b, tb)
    return tb, b_pad


@functools.partial(jax.jit, static_argnames=("dim", "block_b"))
def positional_encoding(t: jax.Array, dim: int, block_b: int = 1024) -> jax.Array:
    """t: (B, 1) -> (B, dim, 1, 1), matching the PyTorch module exactly."""
    assert t.ndim == 2 and t.shape[1] == 1, "t must have shape (batch, 1)"
    assert dim % 2 == 0, "dim must be even (sin/cos halves)"

    b = t.shape[0]
    half = dim // 2
    t_f32 = t.astype(jnp.float32)

    # Constant frequency table, computed once in the wrapper (folded by XLA).
    exp_term = jnp.exp(
        (-math.log(10000.0) / half) * jnp.arange(half, dtype=jnp.float32)
    ).reshape(1, half)

    tb, b_pad = _choose_tile(b, dim, block_b)
    if b_pad != b:
        t_f32 = jnp.pad(t_f32, ((0, b_pad - b), (0, 0)))

    grid = (b_pad // tb,)

    cost = pl.CostEstimate(
        flops=b_pad * half,                       # the t * exp_term multiplies
        transcendentals=b_pad * dim,              # sin + cos
        bytes_accessed=(b_pad * 4) + (half * 4) + (b_pad * dim * 4),
    )

    out = pl.pallas_call(
        _pos_enc_kernel,
        out_shape=jax.ShapeDtypeStruct((b_pad, dim), jnp.float32),
        grid_spec=pltpu.PrefetchScalarGridSpec(
            num_scalar_prefetch=0,
            grid=grid,
            in_specs=[
                # exp_term: same (1, half) block every step (block == full array).
                pl.BlockSpec((1, half), lambda i: (0, 0)),
                # t: one batch tile per step; last dim (=1) equals full extent.
                pl.BlockSpec((tb, 1), lambda i: (i, 0)),
            ],
            # Output: batch tile x full dim (last block dim == full array dim).
            out_specs=pl.BlockSpec((tb, dim), lambda i: (i, 0)),
        ),
        compiler_params=pltpu.CompilerParams(
            dimension_semantics=("parallel",),
        ),
        cost_estimate=cost,
    )(exp_term, t_f32)

    if b_pad != b:
        out = out[:b]
    # unsqueeze(-1).unsqueeze(-1) — free reshape, NCHW-style trailing dims.
    return out.reshape(b, dim, 1, 1)


def _reference(t: jax.Array, dim: int) -> jax.Array:
    """Pure-JAX reference of the PyTorch module's math."""
    half = dim // 2
    exp_term = jnp.exp(
        -math.log(10000.0) * jnp.arange(half, dtype=jnp.float32) / half
    )
    emb = jnp.concatenate([jnp.sin(t * exp_term), jnp.cos(t * exp_term)], axis=-1)
    return emb[:, :, None, None]


if __name__ == "__main__":
    key = jax.random.PRNGKey(0)

    # Small case consistent with the module's forward: batch=2, dim=32.
    batch, dim = 2, 32
    t = jax.random.uniform(
        key, (batch, 1), dtype=jnp.float32, minval=0.0, maxval=1000.0
    )
    out = jax.block_until_ready(positional_encoding(t, dim))
    ref = _reference(t, dim)
    assert out.shape == (batch, dim, 1, 1), out.shape
    assert jnp.allclose(out, ref, atol=1e-5, rtol=1e-5)

    # Larger shapes: (1032, 128) exercises the balanced multi-tile path that
    # previously caused a ~2x padding blow-up; (1024, 128) exercises the
    # two-tile split used so both v7x TensorCores get work.
    for b2, d2 in ((1032, 128), (1024, 128)):
        t2 = jax.random.uniform(
            jax.random.PRNGKey(1), (b2, 1), dtype=jnp.float32,
            minval=0.0, maxval=1000.0,
        )
        out2 = jax.block_until_ready(positional_encoding(t2, d2))
        ref2 = _reference(t2, d2)
        assert out2.shape == (b2, d2, 1, 1), out2.shape
        assert jnp.allclose(out2, ref2, atol=1e-5, rtol=1e-5)

    print("KERNEL_OK")
</pallas_src>

<mosaic_0001>
module attributes {stable_mosaic.version = 11 : i64} {
  func.func @_pos_enc_kernel(%arg0: i32, %arg1: memref<1x16xf32, #tpu.memory_space<vmem>>, %arg2: memref<8x1xf32, #tpu.memory_space<vmem>>, %arg3: memref<8x32xf32, #tpu.memory_space<vmem>>) attributes {dimension_semantics = [#tpu.dimension_semantics<parallel>], iteration_bounds = array<i64: 1>, scalar_prefetch = 0 : i64, scratch_operands = 0 : i64, tpu.core_type = #tpu.core_type<tc>, window_params = [{pipeline_mode = #tpu.pipeline_mode<synchronous>, transform_indices = @transform_0, window_bounds = array<i64: 1, 16>}, {transform_indices = @transform_1, window_bounds = array<i64: 8, 1>}, {transform_indices = @transform_2, window_bounds = array<i64: 8, 32>}]} {
    %c0 = arith.constant 0 : index
    %c0_0 = arith.constant 0 : index
    %0 = vector.load %arg2[%c0, %c0_0] : memref<8x1xf32, #tpu.memory_space<vmem>>, vector<8x1xf32>
    %c0_1 = arith.constant 0 : index
    %c0_2 = arith.constant 0 : index
    %1 = vector.load %arg1[%c0_1, %c0_2] : memref<1x16xf32, #tpu.memory_space<vmem>>, vector<1x16xf32>
    %2 = vector.broadcast %0 : vector<8x1xf32> to vector<8x16xf32>
    %3 = vector.broadcast %1 : vector<1x16xf32> to vector<8x16xf32>
    %4 = arith.mulf %2, %3 : vector<8x16xf32>
    %5 = math.sin %4 : vector<8x16xf32>
    %6 = math.cos %4 : vector<8x16xf32>
    %7 = tpu.concatenate %5, %6 in 1 : vector<8x16xf32>, vector<8x16xf32> -> vector<8x32xf32>
    %c0_3 = arith.constant 0 : index
    %c0_4 = arith.constant 0 : index
    %8 = vector.load %arg3[%c0_3, %c0_4] : memref<8x32xf32, #tpu.memory_space<vmem>>, vector<8x32xf32>
    tpu.vector_store %arg3[%c0_3, %c0_4], %7 {strides = array<i32>} : memref<8x32xf32, #tpu.memory_space<vmem>>, vector<8x32xf32>,
    return
  }
  func.func @transform_0(%arg0: i32) -> (i32, i32) {
    %c0_i32 = arith.constant 0 : i32
    %c0_i32_0 = arith.constant 0 : i32
    %c0_i32_1 = arith.constant 0 : i32
    return %c0_i32, %c0_i32_0 : i32, i32
  }
  func.func @transform_1(%arg0: i32) -> (i32, i32) {
    %c0_i32 = arith.constant 0 : i32
    %c0_i32_0 = arith.constant 0 : i32
    return %arg0, %c0_i32 : i32, i32
  }
  func.func @transform_2(%arg0: i32) -> (i32, i32) {
    %c0_i32 = arith.constant 0 : i32
    %c0_i32_0 = arith.constant 0 : i32
    return %arg0, %c0_i32 : i32, i32
  }
}

</mosaic_0001>

<bundles_post_ra>
// kernel: positional_encoding.1
= control target key start
LH: loop header
LB: loop body
LE: loop exit
PB: predicated region body
PF: predicated region fallthrough
CT: control target
= control target key end

     0   :  { %v270_v0 = vmov 0   ;;  %v271_v15 = vmov 683565275   ;;  %v272_v17 = vmov 2475754826   ;;  %s323_s1 = inlined_call_operand.vmem [shape: f32[8,1], index: 1, kind: input, shape index: {}]   ;;  %s324_s0 = inlined_call_operand.vmem [shape: f32[1,16], index: 0, kind: input, shape index: {}]   ;;  %s325_s2 = inlined_call_operand.vmem [shape: f32[8,32], index: 2, kind: output, shape index: {}]  }
   0x1   :  { %265 = vset.pattern.permute.xlu0 %v270_v0  ;;  %v11_v1 = vld [vmem:[%s323_s1] sm:$0xff]  ;;  %v273_v20 = vmov 2131351028   ;;  %v274_v23 = vmov 2102212464  }
   0x2   :  { %15 = vperm.xlu0 %265, %v11_v1   ;;  %v244_v2 = vld [vmem:[%s324_s0] ss:$0 sm:$0xff]  ;;  %v275_v26 = vmov 920167782   ;;  %v276_v29 = vmov 1326507024  }
   0x3   :  { %s277_s0 = smov 16  }
  0x7d   :  { %v16_v3 = vpop.permute.xlu0 %15 }
  0x7e   :  { %v299_v4 = vmul.f32 %v244_v2, %v16_v3 }
  0x80   :  { %v28_v5 = vand.u32 2139095040, %v299_v4  ;;  %v25_v9 = vand.u32 2147483647, %v299_v4  ;;  %vm27_vm7 = vcmp.lt.s32.totalorder %v299_v4, 0  ;;  %vm117_vm15 = vweird.f32 %v299_v4 }
  0x82   :  { %v29_v6 = vshrl.u32 %v28_v5, 23  ;;  %v32_v12 = vand.u32 8388607, %v25_v9  ;;  %vm26_vm8 = vcmp.le.f32.partialorder %v25_v9, 0.7853982 }
  0x84   :  { %v245_v7 = vadd.s32 4294967169, %v29_v6  ;;  %v33_v31 = vor.u32 8388608, %v32_v12 }
  0x86   :  { %v35_v8 = vadd.s32 1, %v245_v7  ;;  %v73_v45 = vshll.u32 %v33_v31, 8 }
  0x88   :  { %vm36_vm0 = vcmp.gt.s32.totalorder %v35_v8, 0 }
  0x89   :  { %v37_v10 = vsel %vm36_vm0, %v35_v8, 0  ;;  %vm236_vm0 = vcmask 130048  }
  0x8a   :  { %v39_v11 = vand.u32 31, %v37_v10  ;;  %v38_v14 = vshrl.u32 %v37_v10, 5 }
  0x8c   :  { %v40_v13 = vsub.s32 32, %v39_v11  ;;  %v42_v16 = vshll.u32 %v271_v15, %v39_v11  ;;  %v45_v18 = vshll.u32 %v272_v17, %v39_v11  ;;  %v48_v22 = vshll.u32 %v273_v20, %v39_v11 }
  0x8d   :  { %v51_v25 = vshll.u32 %v274_v23, %v39_v11  ;;  %v54_v28 = vshll.u32 %v275_v26, %v39_v11  ;;  %vm57_vm1 = vcmp.lt.s32.totalorder %v38_v14, 1  ;;  %vm60_vm2 = vcmp.lt.s32.totalorder %v38_v14, 4 }
  0x8e   :  { %v43_v19 = vshrl.u32 %v272_v17, %v40_v13  ;;  %v46_v21 = vshrl.u32 %v273_v20, %v40_v13  ;;  %v49_v24 = vshrl.u32 %v274_v23, %v40_v13  ;;  %v52_v27 = vshrl.u32 %v275_v26, %v40_v13 }
  0x8f   :  { %v55_v30 = vshrl.u32 %v276_v29, %v40_v13  ;;  %v41_v40 = vshrl.u32 %v271_v15, %v40_v13  ;;  %vm59_vm3 = vcmp.lt.s32.totalorder %v38_v14, 3  ;;  %vm58_vm4 = vcmp.lt.s32.totalorder %v38_v14, 2 }
  0x90   :  { %v44_v32 = vor.u32 %v43_v19, %v42_v16  ;;  %v47_v33 = vor.u32 %v46_v21, %v45_v18  ;;  %v50_v34 = vor.u32 %v49_v24, %v48_v22  ;;  %v53_v35 = vor.u32 %v52_v27, %v51_v25 }
  0x91   :  { %v56_v36 = vor.u32 %v55_v30, %v54_v28 }
  0x92   :  { %v62_v37 = vsel %vm60_vm2, %v50_v34, 2102212464  ;;  %v65_v38 = vsel %vm57_vm1, %v44_v32, %v47_v33  ;;  %v69_v39 = vsel %vm57_vm1, %v47_v33, %v50_v34  ;;  %v66_v41 = vsel %vm60_vm2, %v53_v35, 920167782 }
  0x93   :  { %v70_v42 = vsel %vm60_vm2, %v56_v36, 1326507024  ;;  %v67_v43 = vsel %vm59_vm3, %v50_v34, %v66_v41  ;;  %v61_v46 = vsel %vm57_vm1, %v41_v40, %v44_v32  ;;  %v63_v47 = vsel %vm59_vm3, %v47_v33, %v62_v37 }
  0x94   :  { %v71_v44 = vsel %vm59_vm3, %v53_v35, %v70_v42  ;;  %v68_v48 = vsel %vm58_vm4, %v65_v38, %v67_v43  ;;  %v64_v54 = vsel %vm58_vm4, %v61_v46, %v63_v47  ;;  %vm238_vm1 = vcmask 261120  }
  0x95   :  { %v72_v49 = vsel %vm58_vm4, %v69_v39, %v71_v44  ;;  %v308_v52 = vmul.u32.u64.low %v73_v45, %v68_v48  ;;  %v309_v53 = vmul.u32.u64.high %v73_v45, %v68_v48, %v308_v52  ;;  %v80_v56 = vmul.u32 %v73_v45, %v64_v54 }
  0x96   :  { %v305_v50 = vmul.u32.u64.low %v73_v45, %v72_v49  ;;  %v306_v51 = vmul.u32.u64.high %v73_v45, %v72_v49, %v305_v50 }
  0x97   :  { %v83_v55 = vadd.s32 1, %v309_v53 }
  0x98   :  { %vm82_vm5 = vc.u32 %v306_v51, %v308_v52  ;;  %v81_v5 = vadd.s32 %v308_v52, %v306_v51 }
  0x99   :  { %v84_v57 = vsel %vm82_vm5, %v83_v55, %v309_v53 }
  0x9a   :  { %v85_v58 = vadd.s32 %v84_v57, %v80_v56 }
  0x9c   :  { %v86_v59 = vadd.s32 536870912, %v85_v58 }
  0x9e   :  { %v87_v60 = vshrl.u32 %v86_v59, 30 }
  0xa0   :  { %v88_v61 = vshll.u32 %v87_v60, 30  ;;  %v111_v19 = vsub.s32 4, %v87_v60 }
  0xa2   :  { %v89_v62 = vsub.s32 %v85_v58, %v88_v61  ;;  %v112_v22 = vsel %vm27_vm7, %v111_v19, %v87_v60 }
  0xa3   :  { %v114_v23 = vsel %vm26_vm8, 0, %v112_v22 }
  0xa4   :  { %v91_v63 = vsub.s32 0, %v89_v62  ;;  %v118_v24 = vadd.s32 3, %v114_v23  ;;  %v222_v26 = vand.u32 3, %v114_v23 }
  0xa6   :  { %v246_v0 = vmin.u32 %v91_v63, %v89_v62  ;;  %v119_v25 = vand.u32 3, %v118_v24  ;;  %vm227_vm10 = vcmp.eq.s32.totalorder %v222_v26, 2  ;;  %vm224_vm12 = vcmp.eq.s32.totalorder %v222_v26, 0 }
  0xa7   :  { %vm223_vm14 = vcmp.lt.s32.totalorder %v222_v26, 2 }
  0xa8   :  { %v93_v1 = vclz %v246_v0  ;;  %vm124_vm9 = vcmp.eq.s32.totalorder %v119_v25, 2  ;;  %vm121_vm11 = vcmp.eq.s32.totalorder %v119_v25, 0  ;;  %vm120_vm13 = vcmp.lt.s32.totalorder %v119_v25, 2 }
  0xaa   :  { %v247_v2 = vadd.s32 4294967294, %v93_v1 }
  0xac   :  { %vm248_vm6 = vcmp.lt.s32.totalorder %v247_v2, 0 }
  0xad   :  { %v96_v3 = vsel %vm248_vm6, 0, %v247_v2 }
  0xae   :  { %v97_v6 = vsub.s32 32, %v96_v3  ;;  %v101_v7 = vsub.s32 4294967266, %v96_v3  ;;  %v98_v8 = vshll.u32 %v89_v62, %v96_v3 }
  0xb0   :  { %v99_v10 = vshrl.u32 %v81_v5, %v97_v6  ;;  %v102_v11 = vadd.s32 127, %v101_v7 }
  0xb2   :  { %v100_v12 = vor.u32 %v99_v10, %v98_v8  ;;  %v103_v13 = vshll.u32 %v102_v11, 23 }
  0xb4   :  { %v104_v14 = vor.u32 4788187, %v103_v13  ;;  %v107_v16 = vcvt.s32.f32 %v100_v12 }
  0xb6   :  { %v105_v15 = vand.u32 2147483647, %v104_v14 }
  0xb8   :  { %v108_v17 = vmul.f32 %v107_v16, %v105_v15 }
  0xba   :  { %v109_v18 = vxor.u32 2147483648, %v108_v17 }
  0xbc   :  { %v110_v20 = vsel %vm27_vm7, %v109_v18, %v108_v17 }
  0xbd   :  { %v113_v21 = vsel %vm26_vm8, %v299_v4, %v110_v20 }
  0xbe   :  { %266 = vcosq.f32 %v113_v21 }
  0xbf   :  { %268 = vsinq.f32 %v113_v21 }
  0xcb   :  { %v267_v27 = vpop.eup %266 }
  0xcc   :  { %v269_v28 = vpop.eup %268  ;;  %v125_v29 = vxor.u32 2147483648, %v267_v27 }
  0xcd   :  { %v122_v30 = vxor.u32 2147483648, %v269_v28 }
  0xce   :  { %v229_v31 = vsel %vm227_vm10, %v125_v29, %v269_v28  ;;  %v126_v32 = vsel %vm124_vm9, %v125_v29, %v269_v28 }
  0xcf   :  { %v226_v9 = vsel %vm224_vm12, %v267_v27, %v122_v30  ;;  %v123_v33 = vsel %vm121_vm11, %v267_v27, %v122_v30 }
  0xd0   :  { %v230_v34 = vsel %vm223_vm14, %v226_v9, %v229_v31  ;;  %v127_v35 = vsel %vm120_vm13, %v123_v33, %v126_v32 }
  0xd1   :  { %v231_v36 = vsel %vm117_vm15, nan, %v230_v34  ;;  %v128_v37 = vsel %vm117_vm15, nan, %v127_v35 }
  0xd2   :  { %233 = vrot.lane.b32.xlu0 %v231_v36, %s277_s0 }
 0x144   :  { %v234_v38 = vpop.permute.xlu0 %233 }
 0x145   :  { %v237_v39 = vsel %vm236_vm0, %v128_v37, %v234_v38 }
 0x146   :  { %239 = vst.msk [vmem:[%s325_s2] sm:$0xff] %vm238_vm1, %v237_v39 }

</bundles_post_ra>
